<compile_context>
chip_gen: v5e
topology: v5e:2x2
jax: 0.10.0
libtpu: 0.0.40
codegen_flags: <defaults>
</compile_context>

<pallas_src>
import functools

import jax
import jax.numpy as jnp
from jax.experimental import pallas as pl
from jax.experimental.pallas import tpu as pltpu


def _sublane(dtype):
    # vreg sublane packing: 8 rows for 4-byte, 16 for 2-byte, 32 for 1-byte.
    return max(8, 32 // jnp.dtype(dtype).itemsize)


def _round_up(x, m):
    return (x + m - 1) // m * m


def _conv_bn_lrelu_kernel(x_ref, w_ref, b_ref, o_ref, *, compute_dtype):
    # Single-K path (full C1 resident).
    #   x_ref: (C1, T)    spatial slab of one image, channels on sublanes
    #   w_ref: (C2t, C1)  1x1 conv weight with BN scale folded in
    #   b_ref: (C2t, 1)   folded BN bias = beta - mean * gamma / sqrt(var+eps)
    #   o_ref: (C2t, T)   lane-dense output slab (T is a multiple of 128)
    xv = x_ref[...]
    if xv.dtype != compute_dtype:
        xv = xv.astype(compute_dtype)          # in-VMEM cast; no extra HBM pass
    y = jnp.dot(w_ref[...], xv, preferred_element_type=jnp.float32)
    y = y + b_ref[...]                         # per-output-channel bias
    y = jnp.maximum(y, 0.1 * y)                # LeakyReLU(0.1)
    o_ref[...] = y.astype(o_ref.dtype)


def _conv_bn_lrelu_kernel_ktiled(x_ref, w_ref, b_ref, o_ref, acc_ref, *,
                                 compute_dtype):
    # K-tiled path for large C1: accumulate partial products in f32 VMEM.
    k = pl.program_id(3)

    @pl.when(k == 0)
    def _():
        acc_ref[...] = jnp.zeros_like(acc_ref)

    xv = x_ref[...]
    if xv.dtype != compute_dtype:
        xv = xv.astype(compute_dtype)
    acc_ref[...] += jnp.dot(w_ref[...], xv, preferred_element_type=jnp.float32)

    @pl.when(k == pl.num_programs(3) - 1)
    def _():
        y = acc_ref[...] + b_ref[...]
        y = jnp.maximum(y, 0.1 * y)
        o_ref[...] = y.astype(o_ref.dtype)


def _vmem_limit_bytes():
    try:
        cap = int(pltpu.get_tpu_info().vmem_capacity_bytes)
    except Exception:
        cap = 64 * 1024 * 1024                 # conservative (v7x-sized) fallback
    # ~3/4 of physical, capped: 96 MiB on v5e/v6e (128 MiB parts), 48 MiB on v7x.
    return min((cap * 3) // 4, 96 * 1024 * 1024)


def _pick_spatial_tile(HW, n_batch, n_c2, tile_c1, tile_c2, n_k,
                       x_dtype, w_dtype, out_dtype, max_tile, budget,
                       resident_weight):
    """Largest multiple of 128 lanes whose pipelined VMEM footprint fits budget."""
    hw_pad = _round_up(HW, 128)
    x_isz = jnp.dtype(x_dtype).itemsize
    w_isz = jnp.dtype(w_dtype).itemsize
    o_isz = jnp.dtype(out_dtype).itemsize
    sub_x, sub_w, sub_o = _sublane(x_dtype), _sublane(w_dtype), _sublane(out_dtype)

    w_bufs = 1 if resident_weight else 2
    fixed = w_bufs * _round_up(tile_c2, sub_w) * _round_up(tile_c1, 128) * w_isz
    fixed += w_bufs * _round_up(tile_c2, 8) * 128 * 4     # f32 bias, lanes pad to 128

    def tile_cost(t):
        c = 2 * _round_up(tile_c1, sub_x) * t * x_isz      # x, double-buffered
        c += 2 * _round_up(tile_c2, sub_o) * t * o_isz     # out, double-buffered
        if n_k > 1:
            c += _round_up(tile_c2, 8) * t * 4             # f32 accumulator
        return c

    cap = min(_round_up(max_tile, 128), hw_pad)
    best = 128
    t = 128
    while t <= cap:
        if fixed + tile_cost(t) <= budget:
            best = t
        t += 128

    # Megacore (v7x has 2 TensorCores): keep at least 2 parallel grid steps.
    if n_batch * n_c2 * pl.cdiv(HW, best) < 2 and best > 128:
        best = max(128, _round_up(pl.cdiv(HW, 2), 128))
    return best


def conv_bn_lrelu(x_nchw, weight, gamma, beta, run_mean, run_var, *,
                  eps=1e-5, compute_dtype=jnp.bfloat16, out_dtype=None,
                  max_tile_hw=2048):
    """Fused 1x1 Conv (no bias) + BatchNorm2d (eval) + LeakyReLU(0.1), NCHW in/out."""
    N, C1, H, W = x_nchw.shape
    C2 = weight.shape[0]
    assert weight.shape == (C2, C1, 1, 1), "only the default k=1 Conv is supported"
    out_dtype = jnp.dtype(x_nchw.dtype) if out_dtype is None else jnp.dtype(out_dtype)

    # Fold BN (running stats) into the weight plus a per-channel f32 bias.
    scale = gamma.astype(jnp.float32) / jnp.sqrt(run_var.astype(jnp.float32) + eps)
    w_mat = (weight.reshape(C2, C1).astype(jnp.float32)
             * scale[:, None]).astype(compute_dtype)                   # (C2, C1)
    bias = (beta.astype(jnp.float32)
            - run_mean.astype(jnp.float32) * scale).reshape(C2, 1)     # f32

    HW = H * W
    x_flat = x_nchw.reshape(N, C1, HW)     # free view; NO dtype cast (no HBM pass)

    # Channel tiling only for large configurations; untouched for small ones.
    tile_c2 = C2 if C2 <= 256 else 256
    # K (input-channel) tiling only when it divides exactly: padded partial
    # blocks on a *reduction* axis would contribute garbage to valid outputs.
    tile_c1 = 256 if (C1 > 256 and C1 % 256 == 0) else C1
    n_c2 = pl.cdiv(C2, tile_c2)
    n_k = pl.cdiv(C1, tile_c1)
    resident_weight = (n_c2 == 1 and n_k == 1)

    vmem_limit = _vmem_limit_bytes()
    tile_hw = _pick_spatial_tile(HW, N, n_c2, tile_c1, tile_c2, n_k,
                                 x_flat.dtype, w_mat.dtype, out_dtype,
                                 max_tile_hw, vmem_limit // 2, resident_weight)
    n_hw = pl.cdiv(HW, tile_hw)

    cost = pl.CostEstimate(
        flops=2 * N * C1 * C2 * HW,
        transcendentals=0,
        bytes_accessed=(x_flat.size * jnp.dtype(x_flat.dtype).itemsize
                        + w_mat.size * jnp.dtype(w_mat.dtype).itemsize
                        + bias.size * 4
                        + N * C2 * HW * jnp.dtype(out_dtype).itemsize),
    )

    def run(use_resident_hint):
        res_kw = ({"pipeline_mode": pl.Buffered(1)}
                  if (use_resident_hint and resident_weight) else {})
        if n_k == 1:
            grid = (N, n_c2, n_hw)
            in_specs = [
                pl.BlockSpec((None, C1, tile_hw), lambda n, j, s: (n, 0, s)),
                pl.BlockSpec((tile_c2, C1), lambda n, j, s: (j, 0), **res_kw),
                pl.BlockSpec((tile_c2, 1), lambda n, j, s: (j, 0), **res_kw),
            ]
            out_specs = pl.BlockSpec((None, tile_c2, tile_hw),
                                     lambda n, j, s: (n, j, s))
            scratch = []
            dims = ("parallel", "parallel", "parallel")
            kern = functools.partial(_conv_bn_lrelu_kernel,
                                     compute_dtype=compute_dtype)
        else:
            grid = (N, n_c2, n_hw, n_k)
            in_specs = [
                pl.BlockSpec((None, tile_c1, tile_hw), lambda n, j, s, k: (n, k, s)),
                pl.BlockSpec((tile_c2, tile_c1), lambda n, j, s, k: (j, k)),
                pl.BlockSpec((tile_c2, 1), lambda n, j, s, k: (j, 0)),
            ]
            out_specs = pl.BlockSpec((None, tile_c2, tile_hw),
                                     lambda n, j, s, k: (n, j, s))
            scratch = [pltpu.VMEM((tile_c2, tile_hw), jnp.float32)]
            dims = ("parallel", "parallel", "parallel", "arbitrary")
            kern = functools.partial(_conv_bn_lrelu_kernel_ktiled,
                                     compute_dtype=compute_dtype)

        return pl.pallas_call(
            kern,
            out_shape=jax.ShapeDtypeStruct((N, C2, HW), out_dtype),
            grid_spec=pltpu.PrefetchScalarGridSpec(
                num_scalar_prefetch=0,
                grid=grid,
                in_specs=in_specs,
                out_specs=out_specs,
                scratch_shapes=scratch,
            ),
            compiler_params=pltpu.CompilerParams(
                dimension_semantics=dims,
                vmem_limit_bytes=int(vmem_limit),
            ),
            cost_estimate=cost,
        )(x_flat, w_mat, bias)

    try:
        out = run(True)
    except Exception:
        # pipeline_mode=Buffered(1) hint unsupported -> default double buffering.
        out = run(False)

    return out.reshape(N, C2, H, W)


def _reference(x_nchw, weight, gamma, beta, run_mean, run_var, eps=1e-5):
    # Pure-JAX reference of the same forward pass (1x1 conv + BN eval + lrelu).
    y = jnp.einsum('nchw,oc->nohw', x_nchw, weight.reshape(weight.shape[0], -1))
    scale = gamma / jnp.sqrt(run_var + eps)
    bias = beta - run_mean * scale
    y = y * scale[None, :, None, None] + bias[None, :, None, None]
    return jnp.where(y >= 0, y, 0.1 * y)


if __name__ == "__main__":
    key = jax.random.PRNGKey(0)
    k_x, k_w, k_g, k_b, k_m, k_v = jax.random.split(key, 6)

    N, C1, C2, H, W = 2, 4, 8, 16, 16
    x = jax.random.normal(k_x, (N, C1, H, W), dtype=jnp.float32)

    # Deterministic synthetic parameters (Conv(c1=4, c2=8) defaults: k=1,
    # norm_type='BN' -> conv has no bias, act_type='lrelu').
    weight = jax.random.normal(k_w, (C2, C1, 1, 1), dtype=jnp.float32) * 0.1
    gamma = 1.0 + 0.1 * jax.random.normal(k_g, (C2,), dtype=jnp.float32)
    beta = 0.1 * jax.random.normal(k_b, (C2,), dtype=jnp.float32)
    run_mean = 0.1 * jax.random.normal(k_m, (C2,), dtype=jnp.float32)
    run_var = jnp.abs(1.0 + 0.1 * jax.random.normal(k_v, (C2,), dtype=jnp.float32))

    ref = _reference(x, weight, gamma, beta, run_mean, run_var)

    # Exact path (f32 MXU operands) -> tight tolerance.
    out_f32 = conv_bn_lrelu(x, weight, gamma, beta, run_mean, run_var,
                            compute_dtype=jnp.float32)
    out_f32 = jax.block_until_ready(out_f32)
    assert out_f32.shape == (N, C2, H, W)
    assert jnp.allclose(out_f32, ref, atol=1e-5, rtol=1e-5)

    # Default perf path: bf16 MXU operands, f32 accumulate/epilogue, f32 output.
    out_def = conv_bn_lrelu(x, weight, gamma, beta, run_mean, run_var)
    out_def = jax.block_until_ready(out_def)
    assert out_def.shape == (N, C2, H, W)
    assert jnp.allclose(out_def, ref, atol=3e-2, rtol=3e-2)

    # Full-bandwidth path: bf16 input and bf16 output.
    out_b16 = conv_bn_lrelu(x.astype(jnp.bfloat16), weight, gamma, beta,
                            run_mean, run_var, out_dtype=jnp.bfloat16)
    out_b16 = jax.block_until_ready(out_b16)
    assert out_b16.shape == (N, C2, H, W) and out_b16.dtype == jnp.bfloat16
    assert jnp.allclose(out_b16.astype(jnp.float32), ref, atol=5e-2, rtol=5e-2)

    # TODO(synk): depthwise=True branch is a no-op (empty Sequential) in the
    # reference module, so it is not implemented; BN uses running stats (eval
    # mode) - training-mode batch statistics are out of scope.
    print("KERNEL_OK")
</pallas_src>

<mosaic_0001>
module attributes {stable_mosaic.version = 11 : i64} {
  func.func @_conv_bn_lrelu_kernel(%arg0: i32, %arg1: i32, %arg2: i32, %arg3: memref<1x4x256xf32, #tpu.memory_space<vmem>>, %arg4: memref<8x4xf32, #tpu.memory_space<vmem>>, %arg5: memref<8x1xf32, #tpu.memory_space<vmem>>, %arg6: memref<1x8x256xf32, #tpu.memory_space<vmem>>) attributes {dimension_semantics = [#tpu.dimension_semantics<parallel>, #tpu.dimension_semantics<parallel>, #tpu.dimension_semantics<parallel>], iteration_bounds = array<i64: 2, 1, 1>, scalar_prefetch = 0 : i64, scratch_operands = 0 : i64, tpu.core_type = #tpu.core_type<tc>, window_params = [{transform_indices = @transform_0, window_bounds = array<i64: 1, 4, 256>}, {pipeline_mode = #tpu.pipeline_mode<synchronous>, transform_indices = @transform_1, window_bounds = array<i64: 8, 4>}, {pipeline_mode = #tpu.pipeline_mode<synchronous>, transform_indices = @transform_2, window_bounds = array<i64: 8, 1>}, {transform_indices = @transform_3, window_bounds = array<i64: 1, 8, 256>}]} {
    %c0 = arith.constant 0 : index
    %c0_0 = arith.constant 0 : index
    %c0_1 = arith.constant 0 : index
    %0 = vector.load %arg3[%c0, %c0_0, %c0_1] : memref<1x4x256xf32, #tpu.memory_space<vmem>>, vector<1x4x256xf32>
    %1 = vector.shape_cast %0 : vector<1x4x256xf32> to vector<4x256xf32>
    %c0_2 = arith.constant 0 : index
    %c0_3 = arith.constant 0 : index
    %2 = vector.load %arg4[%c0_2, %c0_3] : memref<8x4xf32, #tpu.memory_space<vmem>>, vector<8x4xf32>
    %cst = arith.constant dense<0.000000e+00> : vector<8x256xf32>
    %3 = tpu.matmul %2, %1, %cst {dimension_numbers = #tpu.dot_dimension_numbers<[1], [0], [0], [1], [0, 0, 1, 1], [], []>} : vector<8x4xf32>, vector<4x256xf32>, vector<8x256xf32> -> vector<8x256xf32>
    %c0_4 = arith.constant 0 : index
    %c0_5 = arith.constant 0 : index
    %4 = vector.load %arg5[%c0_4, %c0_5] : memref<8x1xf32, #tpu.memory_space<vmem>>, vector<8x1xf32>
    %5 = vector.broadcast %4 : vector<8x1xf32> to vector<8x256xf32>
    %6 = arith.addf %3, %5 : vector<8x256xf32>
    %cst_6 = arith.constant 1.000000e-01 : f32
    %7 = vector.broadcast %cst_6 : f32 to vector<8x256xf32>
    %8 = arith.mulf %7, %6 : vector<8x256xf32>
    %9 = arith.maximumf %6, %8 : vector<8x256xf32>
    %c0_7 = arith.constant 0 : index
    %c0_8 = arith.constant 0 : index
    %c0_9 = arith.constant 0 : index
    %10 = vector.load %arg6[%c0_7, %c0_8, %c0_9] : memref<1x8x256xf32, #tpu.memory_space<vmem>>, vector<1x8x256xf32>
    %11 = vector.shape_cast %10 : vector<1x8x256xf32> to vector<8x256xf32>
    %12 = vector.shape_cast %9 : vector<8x256xf32> to vector<1x8x256xf32>
    tpu.vector_store %arg6[%c0_7, %c0_8, %c0_9], %12 {strides = array<i32>} : memref<1x8x256xf32, #tpu.memory_space<vmem>>, vector<1x8x256xf32>,
    return
  }
  func.func @transform_0(%arg0: i32, %arg1: i32, %arg2: i32) -> (i32, i32, i32) {
    %c0_i32 = arith.constant 0 : i32
    %c0_i32_0 = arith.constant 0 : i32
    return %arg0, %c0_i32, %arg2 : i32, i32, i32
  }
  func.func @transform_1(%arg0: i32, %arg1: i32, %arg2: i32) -> (i32, i32) {
    %c0_i32 = arith.constant 0 : i32
    %c0_i32_0 = arith.constant 0 : i32
    return %arg1, %c0_i32 : i32, i32
  }
  func.func @transform_2(%arg0: i32, %arg1: i32, %arg2: i32) -> (i32, i32) {
    %c0_i32 = arith.constant 0 : i32
    %c0_i32_0 = arith.constant 0 : i32
    return %arg1, %c0_i32 : i32, i32
  }
  func.func @transform_3(%arg0: i32, %arg1: i32, %arg2: i32) -> (i32, i32, i32) {
    %c0_i32 = arith.constant 0 : i32
    return %arg0, %arg1, %arg2 : i32, i32, i32
  }
}

module attributes {stable_mosaic.version = 11 : i64} {
  func.func @_conv_bn_lrelu_kernel(%arg0: i32, %arg1: i32, %arg2: i32, %arg3: memref<1x4x256xf32, #tpu.memory_space<vmem>>, %arg4: memref<8x4xf32, #tpu.memory_space<vmem>>, %arg5: memref<8x1xf32, #tpu.memory_space<vmem>>, %arg6: memref<1x8x256xf32, #tpu.memory_space<vmem>>) attributes {dimension_semantics = [#tpu.dimension_semantics<parallel>, #tpu.dimension_semantics<parallel>, #tpu.dimension_semantics<parallel>], iteration_bounds = array<i64: 2, 1, 1>, scalar_prefetch = 0 : i64, scratch_operands = 0 : i64, tpu.core_type = #tpu.core_type<tc>, window_params = [{transform_indices = @transform_0, window_bounds = array<i64: 1, 4, 256>}, {transform_indices = @transform_1, window_bounds = array<i64: 8, 4>}, {transform_indices = @transform_2, window_bounds = array<i64: 8, 1>}, {transform_indices = @transform_3, window_bounds = array<i64: 1, 8, 256>}]} {
    %c0 = arith.constant 0 : index
    %c0_0 = arith.constant 0 : index
    %c0_1 = arith.constant 0 : index
    %0 = vector.load %arg3[%c0, %c0_0, %c0_1] : memref<1x4x256xf32, #tpu.memory_space<vmem>>, vector<1x4x256xf32>
    %1 = vector.shape_cast %0 : vector<1x4x256xf32> to vector<4x256xf32>
    %c0_2 = arith.constant 0 : index
    %c0_3 = arith.constant 0 : index
    %2 = vector.load %arg4[%c0_2, %c0_3] : memref<8x4xf32, #tpu.memory_space<vmem>>, vector<8x4xf32>
    %cst = arith.constant dense<0.000000e+00> : vector<8x256xf32>
    %3 = tpu.matmul %2, %1, %cst {dimension_numbers = #tpu.dot_dimension_numbers<[1], [0], [0], [1], [0, 0, 1, 1], [], []>} : vector<8x4xf32>, vector<4x256xf32>, vector<8x256xf32> -> vector<8x256xf32>
    %c0_4 = arith.constant 0 : index
    %c0_5 = arith.constant 0 : index
    %4 = vector.load %arg5[%c0_4, %c0_5] : memref<8x1xf32, #tpu.memory_space<vmem>>, vector<8x1xf32>
    %5 = vector.broadcast %4 : vector<8x1xf32> to vector<8x256xf32>
    %6 = arith.addf %3, %5 : vector<8x256xf32>
    %cst_6 = arith.constant 1.000000e-01 : f32
    %7 = vector.broadcast %cst_6 : f32 to vector<8x256xf32>
    %8 = arith.mulf %7, %6 : vector<8x256xf32>
    %9 = arith.maximumf %6, %8 : vector<8x256xf32>
    %c0_7 = arith.constant 0 : index
    %c0_8 = arith.constant 0 : index
    %c0_9 = arith.constant 0 : index
    %10 = vector.load %arg6[%c0_7, %c0_8, %c0_9] : memref<1x8x256xf32, #tpu.memory_space<vmem>>, vector<1x8x256xf32>
    %11 = vector.shape_cast %10 : vector<1x8x256xf32> to vector<8x256xf32>
    %12 = vector.shape_cast %9 : vector<8x256xf32> to vector<1x8x256xf32>
    tpu.vector_store %arg6[%c0_7, %c0_8, %c0_9], %12 {strides = array<i32>} : memref<1x8x256xf32, #tpu.memory_space<vmem>>, vector<1x8x256xf32>,
    return
  }
  func.func @transform_0(%arg0: i32, %arg1: i32, %arg2: i32) -> (i32, i32, i32) {
    %c0_i32 = arith.constant 0 : i32
    %c0_i32_0 = arith.constant 0 : i32
    return %arg0, %c0_i32, %arg2 : i32, i32, i32
  }
  func.func @transform_1(%arg0: i32, %arg1: i32, %arg2: i32) -> (i32, i32) {
    %c0_i32 = arith.constant 0 : i32
    %c0_i32_0 = arith.constant 0 : i32
    return %arg1, %c0_i32 : i32, i32
  }
  func.func @transform_2(%arg0: i32, %arg1: i32, %arg2: i32) -> (i32, i32) {
    %c0_i32 = arith.constant 0 : i32
    %c0_i32_0 = arith.constant 0 : i32
    return %arg1, %c0_i32 : i32, i32
  }
  func.func @transform_3(%arg0: i32, %arg1: i32, %arg2: i32) -> (i32, i32, i32) {
    %c0_i32 = arith.constant 0 : i32
    return %arg0, %arg1, %arg2 : i32, i32, i32
  }
}

</mosaic_0001>

<bundles_post_ra>
// kernel: tpu_custom_call.1
= control target key start
LH: loop header
LB: loop body
LE: loop exit
PB: predicated region body
PF: predicated region fallthrough
CT: control target
= control target key end

     0   :  { %8 = vsyncpa [#allocation3], 0  ;;  %s724_s0 = inlined_call_operand.vmem [shape: f32[2,4,256], index: 0, kind: input, shape index: {}]   ;;  %s725_s1 = inlined_call_operand.vmem [shape: f32[8,4], index: 1, kind: input, shape index: {}]   ;;  %s726_s2 = inlined_call_operand.vmem [shape: f32[8,1], index: 2, kind: input, shape index: {}]   ;;  %s727_s3 = inlined_call_operand.hbm [shape: f32[2,8,256], index: 3, kind: output, shape index: {}]  }
   0x1   :  { %10 = vsyncpa [#allocation3 + $0x1], 0  ;;  %s621_s12 = smov 0   ;;  %s623_s13 = smov 0  }
   0x2   :  { %s625_s14 = smov 0   ;;  %s627_s15 = smov 0  }
   0x3   :  { %s629_s16 = smov 0   ;;  %s631_s17 = smov 0  }
   0x4 LB: > { %s442_s18 = sadd.s32 4294967295, %s598_s17   ;;  %s443_s19 = sadd.s32 4294967294, %s598_s17   ;;  %s598_s17 = sphi %s631_s17, %s16_s17   ;;  %s594_s16 = sphi %s629_s16, %s734_s16   ;;  %s590_s15 = sphi %s627_s15, %s733_s15   ;;  %s586_s14 = sphi %s625_s14, %s732_s14   ;;  %s582_s13 = sphi %s623_s13, %s731_s13   ;;  %s578_s12 = sphi %s621_s12, %s730_s12  }
   0x5   : > { %s35_s20 = sadd.s32 1, %s594_s16  ;;  %s126_s21 = sadd.s32 1, %s586_s14 }
   0x6   : > { %p37_p0 = scmp.ge.s32.totalorder %s35_s20, 2  ;;  %p136_p1 = scmp.ne.s32.totalorder %s586_s14, %s582_s13 }
   0x7   : > { %p137_p2 = scmp.eq.s32.totalorder %s442_s18, 1  ;;  %p142_p3 = scmp.ne.s32.totalorder %s582_s13, %s578_s12 }
   0x8   : > { %s736_s20 = smov (%p37_p0, %s35_s20), 0  ;;  %p143_p5 = scmp.eq.s32.totalorder %s443_s19, 1 }
   0x9   : > { %p661_p4 = por %p137_p2, %p136_p1  ;;  %s119_s23 = ssub.s32 %s594_s16, %s736_s20 }
   0xa   : > { %p448_p6 = scmp.ge.s32.totalorder %s598_s17, 1  ;;  %p124_p7 = scmp.eq.s32.totalorder %s119_s23, 0 }
   0xb   : > { %p668_p8 = por %p143_p5, %p142_p3  ;;  %p188_p9 = scmp.lt.s32.totalorder %s598_s17, 3 }
   0xc   : > { %s674_s25 = scalar_select %p124_p7, %s586_s14, %s126_s21  }
   0xd   : > { %p189_p10 = pnand %p448_p6, %p188_p9 }
   0xe   : > { %p225_p11 = scmp.lt.s32.totalorder (!%p189_p10), %s590_s15, 1  ;;  %s221_s8 = sand.u32 (!%p189_p10), 1, %s582_s13  }
   0xf   : > { %192 = sbr.rel (%p189_p10) target bundleno = 170 (0xaa), region = 32  ;;  %s449_s9 = sshll.u32 (!%p189_p10), %s221_s8, 4 }
  0x10   : > { %s462_s10 = sshll.u32 (!%p189_p10), %s590_s15, 4  ;;  %s223_s21 = scalar_lea.vmem (!%p189_p10), [#allocation2], %s449_s9 }
  0x11   : > { %s326_s19 = scalar_lea.hbm (!%p189_p10), %s727_s3, %s462_s10  ;;  %s328_s23 = sshll.u32 (!%p189_p10), %s223_s21, 4  ;;  %s329_s23 = int_to_ptr.vmem [resolvable:$true] %s328_s23 }
  0x12   : > { %s330_s26 = sshll.u32 (!%p189_p10), %s326_s19, 4  ;;  %s540_s4 = scalar_lea.hbm (!%p189_p10), %s727_s3, 32  ;;  %s331_s26 = int_to_ptr.hbm [resolvable:$true] %s330_s26 }
  0x13   : > { %s534_s27 = sshra.s32 (!%p189_p10), %s331_s26, 4  ;;  %s535_s27 = int_to_ptr.hbm [resolvable:$true] %s534_s27 }
  0x14   : > { %v245_v0 = vld [vmem:[%s726_s2] sm:$0xff]  ;;  %v600_v1 = vmov 0   ;;  %s226_s28 = scalar_select %p225_p11, %s590_s15, 1  ;;  %vm259_vm0 = vcmask 1043456   ;;  %vm255_vm1 = vcmask 31744  }
  0x15   : > { %519 = vset.pattern.permute.xlu0 %v600_v1  ;;  %v244_v3 = vld [vmem:[%s725_s1] sm:$0xff]  ;;  %s311_s15 = scalar_lea.sflag [#allocation3], %s221_s8  ;;  %p541_p1 = scmp.lt.s32.totalorder %s535_s27, %s727_s3 }
  0x16   : > { %248 = vperm.xlu0 %519, %v245_v0   ;;  %s461_s29 = sshll.u32 %s226_s28, 3  ;;  %s536_s28 = scalar_lea.hbm %s535_s27, 16 }
  0x17   : > { %s232_s5 = scalar_lea.vmem %s724_s0, %s461_s29  ;;  %p537_p12 = scmp.ne.s32.totalorder %s535_s27, %s536_s28 }
  0x18   : > { %v243_v2 = vld [vmem:[%s232_s5] sm:$0xff]  ;;  %p542_p2 = scmp.lt.s32.totalorder %s540_s4, %s536_s28 }
  0x19   : > { %252 = vst [vmem:[#allocation1] ss:$2 sm:$0xff] %v243_v2  ;;  %p538_p13 = pnand %p537_p12, %p661_p4 }
  0x1a   : > { %p543_p3 = por %p542_p2, %p541_p1 }
  0x1b   : > { %p539_p0 = pneg %p538_p13 }
  0x1d   : > { %p544_p5 = pnand %p543_p3, %p539_p0 }
  0x20   : > { %v253_v4 = vld.sshfl [vmem:[#allocation1] sm:$0xff pattern:$0x75316420]  ;;  %v254_v5 = vld.sshfl [vmem:[#allocation1 + $0x8] sm:$0xff pattern:$0x75316420] }
  0x21   : > { %452 = vmatpush.msk.msra.mxu0 %vm259_vm0, %v253_v4  ;;  %454 = vmatpush.msk.msra.mxu1 %vm259_vm0, %v254_v5 }
  0x22   : > { %453 = vmatmul.msk.f32.vlgmr.msra.gmra.mxu0 %vm255_vm1, %v244_v3  ;;  %455 = vmatmul.msk.f32.vlgmr.msra.gmra.mxu1 %vm255_vm1, %v244_v3 }
  0x88   : > { %v249_v6 = vpop.permute.xlu0 %248 }
  0x9f   : > { %v281_v7 = vpop.f32.mrf.mxu0  ;;  %v301_v8 = vpop.f32.mrf.mxu1 }
  0xa0   : > { %v282_v9 = vadd.f32 %v281_v7, %v249_v6  ;;  %v302_v10 = vadd.f32 %v301_v8, %v249_v6 }
  0xa2   : > { %v304_v11 = vmul.f32 0.1, %v282_v9  ;;  %v305_v12 = vmul.f32 0.1, %v302_v10 }
  0xa4   : > { %v306_v13 = vmax.f32 %v282_v9, %v304_v11  ;;  %v307_v14 = vmax.f32 %v302_v10, %v305_v12 }
  0xa6   : > { %308 = vst [vmem:[%s223_s21] sm:$0xff] %v306_v13 }
  0xa7   : > { %309 = vst [vmem:[%s223_s21 + $0x8] sm:$0xff] %v307_v14 }
  0xa8   : > { %547 = shalt.err (!%p544_p5)
}
  0xa9   : > { %463 = dma.vmem_to_hbm [thread:$0]  (%p661_p4), %s329_s23, 256, %s331_s26, %s311_s15  }
  0xaa PF: > { %p469_p6 = scmp.ge.s32.totalorder %s598_s17, 2  ;;  %s342_s7 = sand.u32 1, %s578_s12  }
  0xab   : > { %s343_s8 = scalar_lea.sflag [#allocation3], %s342_s7 }
  0xac   : > { %p466_p7 = pnand %p469_p6, %p668_p8 }
  0xae   : > { %p467_p9 = pneg %p466_p7 }
  0xb0   : > { %573 = dma.done.wait (%p467_p9), %s343_s8, 256  }
  0xb1   : > { %575 = vsyncadd (%p467_p9), %s343_s8, 4294967040  ;;  %s16_s17 = sadd.s32 1, %s598_s17   ;;  %s730_s12 = smov %s582_s13 }
  0xb2   : > { %p13_p10 = scmp.ge.s32.totalorder %s16_s17, 4   ;;  %s731_s13 = smov %s586_s14 }
  0xb3   : > { %s732_s14 = smov %s674_s25  ;;  %s733_s15 = smov %s594_s16 }
  0xb4   : > { %s734_s16 = smov %s736_s20  ;;  %15 = sbr.rel (!%p13_p10) target bundleno = 4 (0x4), region = 73 }
  0xb9   :  { %349 = vsyncpa [#allocation3], 1 }
  0xba   :  { %351 = vsyncpa [#allocation3 + $0x1], 1 }

// kernel: tpu_custom_call.1
= control target key start
LH: loop header
LB: loop body
LE: loop exit
PB: predicated region body
PF: predicated region fallthrough
CT: control target
= control target key end

     0   :  { %8 = vsyncpa [#allocation3], 0  ;;  %s724_s0 = inlined_call_operand.vmem [shape: f32[2,4,256], index: 0, kind: input, shape index: {}]   ;;  %s725_s1 = inlined_call_operand.vmem [shape: f32[8,4], index: 1, kind: input, shape index: {}]   ;;  %s726_s2 = inlined_call_operand.vmem [shape: f32[8,1], index: 2, kind: input, shape index: {}]   ;;  %s727_s3 = inlined_call_operand.hbm [shape: f32[2,8,256], index: 3, kind: output, shape index: {}]  }
   0x1   :  { %10 = vsyncpa [#allocation3 + $0x1], 0  ;;  %s621_s12 = smov 0   ;;  %s623_s13 = smov 0  }
   0x2   :  { %s625_s14 = smov 0   ;;  %s627_s15 = smov 0  }
   0x3   :  { %s629_s16 = smov 0   ;;  %s631_s17 = smov 0  }
   0x4 LB: > { %s442_s18 = sadd.s32 4294967295, %s598_s17   ;;  %s443_s19 = sadd.s32 4294967294, %s598_s17   ;;  %s598_s17 = sphi %s631_s17, %s16_s17   ;;  %s594_s16 = sphi %s629_s16, %s734_s16   ;;  %s590_s15 = sphi %s627_s15, %s733_s15   ;;  %s586_s14 = sphi %s625_s14, %s732_s14   ;;  %s582_s13 = sphi %s623_s13, %s731_s13   ;;  %s578_s12 = sphi %s621_s12, %s730_s12  }
   0x5   : > { %s35_s20 = sadd.s32 1, %s594_s16  ;;  %s126_s21 = sadd.s32 1, %s586_s14 }
   0x6   : > { %p37_p0 = scmp.ge.s32.totalorder %s35_s20, 2  ;;  %p136_p1 = scmp.ne.s32.totalorder %s586_s14, %s582_s13 }
   0x7   : > { %p137_p2 = scmp.eq.s32.totalorder %s442_s18, 1  ;;  %p142_p3 = scmp.ne.s32.totalorder %s582_s13, %s578_s12 }
   0x8   : > { %s736_s20 = smov (%p37_p0, %s35_s20), 0  ;;  %p143_p5 = scmp.eq.s32.totalorder %s443_s19, 1 }
   0x9   : > { %p661_p4 = por %p137_p2, %p136_p1  ;;  %s119_s23 = ssub.s32 %s594_s16, %s736_s20 }
   0xa   : > { %p448_p6 = scmp.ge.s32.totalorder %s598_s17, 1  ;;  %p124_p7 = scmp.eq.s32.totalorder %s119_s23, 0 }
   0xb   : > { %p668_p8 = por %p143_p5, %p142_p3  ;;  %p188_p9 = scmp.lt.s32.totalorder %s598_s17, 3 }
   0xc   : > { %s674_s25 = scalar_select %p124_p7, %s586_s14, %s126_s21  }
   0xd   : > { %p189_p10 = pnand %p448_p6, %p188_p9 }
   0xe   : > { %p225_p11 = scmp.lt.s32.totalorder (!%p189_p10), %s590_s15, 1  ;;  %s221_s8 = sand.u32 (!%p189_p10), 1, %s582_s13  }
   0xf   : > { %192 = sbr.rel (%p189_p10) target bundleno = 170 (0xaa), region = 32  ;;  %s449_s9 = sshll.u32 (!%p189_p10), %s221_s8, 4 }
  0x10   : > { %s462_s10 = sshll.u32 (!%p189_p10), %s590_s15, 4  ;;  %s223_s21 = scalar_lea.vmem (!%p189_p10), [#allocation2], %s449_s9 }
  0x11   : > { %s326_s19 = scalar_lea.hbm (!%p189_p10), %s727_s3, %s462_s10  ;;  %s328_s23 = sshll.u32 (!%p189_p10), %s223_s21, 4  ;;  %s329_s23 = int_to_ptr.vmem [resolvable:$true] %s328_s23 }
  0x12   : > { %s330_s26 = sshll.u32 (!%p189_p10), %s326_s19, 4  ;;  %s540_s4 = scalar_lea.hbm (!%p189_p10), %s727_s3, 32  ;;  %s331_s26 = int_to_ptr.hbm [resolvable:$true] %s330_s26 }
  0x13   : > { %s534_s27 = sshra.s32 (!%p189_p10), %s331_s26, 4  ;;  %s535_s27 = int_to_ptr.hbm [resolvable:$true] %s534_s27 }
  0x14   : > { %v245_v0 = vld [vmem:[%s726_s2] sm:$0xff]  ;;  %v600_v1 = vmov 0   ;;  %s226_s28 = scalar_select %p225_p11, %s590_s15, 1  ;;  %vm259_vm0 = vcmask 1043456   ;;  %vm255_vm1 = vcmask 31744  }
  0x15   : > { %519 = vset.pattern.permute.xlu0 %v600_v1  ;;  %v244_v3 = vld [vmem:[%s725_s1] sm:$0xff]  ;;  %s311_s15 = scalar_lea.sflag [#allocation3], %s221_s8  ;;  %p541_p1 = scmp.lt.s32.totalorder %s535_s27, %s727_s3 }
  0x16   : > { %248 = vperm.xlu0 %519, %v245_v0   ;;  %s461_s29 = sshll.u32 %s226_s28, 3  ;;  %s536_s28 = scalar_lea.hbm %s535_s27, 16 }
  0x17   : > { %s232_s5 = scalar_lea.vmem %s724_s0, %s461_s29  ;;  %p537_p12 = scmp.ne.s32.totalorder %s535_s27, %s536_s28 }
  0x18   : > { %v243_v2 = vld [vmem:[%s232_s5] sm:$0xff]  ;;  %p542_p2 = scmp.lt.s32.totalorder %s540_s4, %s536_s28 }
  0x19   : > { %252 = vst [vmem:[#allocation1] ss:$2 sm:$0xff] %v243_v2  ;;  %p538_p13 = pnand %p537_p12, %p661_p4 }
  0x1a   : > { %p543_p3 = por %p542_p2, %p541_p1 }
  0x1b   : > { %p539_p0 = pneg %p538_p13 }
  0x1d   : > { %p544_p5 = pnand %p543_p3, %p539_p0 }
  0x20   : > { %v253_v4 = vld.sshfl [vmem:[#allocation1] sm:$0xff pattern:$0x75316420]  ;;  %v254_v5 = vld.sshfl [vmem:[#allocation1 + $0x8] sm:$0xff pattern:$0x75316420] }
  0x21   : > { %452 = vmatpush.msk.msra.mxu0 %vm259_vm0, %v253_v4  ;;  %454 = vmatpush.msk.msra.mxu1 %vm259_vm0, %v254_v5 }
  0x22   : > { %453 = vmatmul.msk.f32.vlgmr.msra.gmra.mxu0 %vm255_vm1, %v244_v3  ;;  %455 = vmatmul.msk.f32.vlgmr.msra.gmra.mxu1 %vm255_vm1, %v244_v3 }
  0x88   : > { %v249_v6 = vpop.permute.xlu0 %248 }
  0x9f   : > { %v281_v7 = vpop.f32.mrf.mxu0  ;;  %v301_v8 = vpop.f32.mrf.mxu1 }
  0xa0   : > { %v282_v9 = vadd.f32 %v281_v7, %v249_v6  ;;  %v302_v10 = vadd.f32 %v301_v8, %v249_v6 }
  0xa2   : > { %v304_v11 = vmul.f32 0.1, %v282_v9  ;;  %v305_v12 = vmul.f32 0.1, %v302_v10 }
  0xa4   : > { %v306_v13 = vmax.f32 %v282_v9, %v304_v11  ;;  %v307_v14 = vmax.f32 %v302_v10, %v305_v12 }
  0xa6   : > { %308 = vst [vmem:[%s223_s21] sm:$0xff] %v306_v13 }
  0xa7   : > { %309 = vst [vmem:[%s223_s21 + $0x8] sm:$0xff] %v307_v14 }
  0xa8   : > { %547 = shalt.err (!%p544_p5)
}
  0xa9   : > { %463 = dma.vmem_to_hbm [thread:$0]  (%p661_p4), %s329_s23, 256, %s331_s26, %s311_s15  }
  0xaa PF: > { %p469_p6 = scmp.ge.s32.totalorder %s598_s17, 2  ;;  %s342_s7 = sand.u32 1, %s578_s12  }
  0xab   : > { %s343_s8 = scalar_lea.sflag [#allocation3], %s342_s7 }
  0xac   : > { %p466_p7 = pnand %p469_p6, %p668_p8 }
  0xae   : > { %p467_p9 = pneg %p466_p7 }
  0xb0   : > { %573 = dma.done.wait (%p467_p9), %s343_s8, 256  }
  0xb1   : > { %575 = vsyncadd (%p467_p9), %s343_s8, 4294967040  ;;  %s16_s17 = sadd.s32 1, %s598_s17   ;;  %s730_s12 = smov %s582_s13 }
  0xb2   : > { %p13_p10 = scmp.ge.s32.totalorder %s16_s17, 4   ;;  %s731_s13 = smov %s586_s14 }
  0xb3   : > { %s732_s14 = smov %s674_s25  ;;  %s733_s15 = smov %s594_s16 }
  0xb4   : > { %s734_s16 = smov %s736_s20  ;;  %15 = sbr.rel (!%p13_p10) target bundleno = 4 (0x4), region = 73 }
  0xb9   :  { %349 = vsyncpa [#allocation3], 1 }
  0xba   :  { %351 = vsyncpa [#allocation3 + $0x1], 1 }

</bundles_post_ra>
